<compile_context>
chip_gen: v6e
topology: v6e:2x2x1
jax: 0.10.0
libtpu: 0.0.40
codegen_flags: <defaults>
</compile_context>

<pallas_src>
import jax
import jax.numpy as jnp
from jax.experimental import pallas as pl
from jax.experimental.pallas import tpu as pltpu


def convblock_kernel(x_ref, w_ref, b_ref, a_ref, o_ref):
    # x_ref : (1, BM, 9*Cin)     bf16  -- im2col rows for BM output pixels
    # w_ref : (9*Cin, Cout_pad)  bf16  -- folded conv weights (lane-dense N dim)
    # b_ref : (1, Cout_pad)      f32   -- bias row (zeros in padded lanes)
    # a_ref : (1,)               f32   -- PReLU alpha, in SMEM
    # o_ref : (1, BM, Cout_pad)  f32
    acc = jnp.dot(x_ref[0], w_ref[...], preferred_element_type=jnp.float32)
    acc = acc + b_ref[...]                            # broadcast (1, Cout_pad)
    alpha = a_ref[0]
    out = jnp.where(acc >= 0.0, acc, alpha * acc)     # PReLU (single shared alpha)
    o_ref[...] = out[None].astype(o_ref.dtype)


def _pick_block_m(hw, target=1024):
    """Largest multiple-of-8 divisor of hw that is <= target (fallback: hw)."""
    best = None
    m = 8
    while m <= min(hw, target):
        if hw % m == 0:
            best = m
        m += 8
    return best if best is not None else hw


def conv_block_forward(x_nchw, w_oihw, bias, alpha, *, block_m_target=1024):
    """ConvBlock(input_size, output_size).forward(x) with the module defaults:
    Conv2d(kernel_size=3, stride=1, padding=1, bias=True), norm=None, PReLU.
    x_nchw: (N, Cin, H, W) float32."""
    N, Cin, H, W = x_nchw.shape
    Cout = w_oihw.shape[0]
    K = 9 * Cin
    Cout_pad = ((Cout + 127) // 128) * 128

    # ---- wrapper-side layout plumbing only (no FLOPs on the data) ----------
    x_nhwc = jnp.transpose(x_nchw, (0, 2, 3, 1))                     # (N,H,W,Cin)
    x_padded = jnp.pad(x_nhwc, ((0, 0), (1, 1), (1, 1), (0, 0)))     # zero pad=1
    # im2col: tap order (kh, kw, cin) matches the weight reshape below.
    cols = [x_padded[:, kh:kh + H, kw:kw + W, :]
            for kh in range(3) for kw in range(3)]
    x_col = jnp.concatenate(cols, axis=-1)                           # (N,H,W,9*Cin)
    x_col = x_col.reshape(N, H * W, K).astype(jnp.bfloat16)

    w_mat = jnp.transpose(w_oihw, (2, 3, 1, 0)).reshape(K, Cout)     # (kh,kw,ci),co
    w_mat = jnp.pad(w_mat.astype(jnp.bfloat16), ((0, 0), (0, Cout_pad - Cout)))
    b_row = jnp.pad(bias.astype(jnp.float32).reshape(1, Cout),
                    ((0, 0), (0, Cout_pad - Cout)))
    a_sc = jnp.asarray(alpha, jnp.float32).reshape(1)

    BM = _pick_block_m(H * W, block_m_target)
    grid = (N, (H * W) // BM)

    out_col = pl.pallas_call(
        convblock_kernel,
        out_shape=jax.ShapeDtypeStruct((N, H * W, Cout_pad), jnp.float32),
        grid_spec=pltpu.PrefetchScalarGridSpec(
            num_scalar_prefetch=0,
            grid=grid,
            in_specs=[
                pl.BlockSpec((1, BM, K), lambda n, m: (n, m, 0)),
                pl.BlockSpec((K, Cout_pad), lambda n, m: (0, 0)),
                pl.BlockSpec((1, Cout_pad), lambda n, m: (0, 0)),
                pl.BlockSpec(memory_space=pltpu.MemorySpace.SMEM),
            ],
            out_specs=pl.BlockSpec((1, BM, Cout_pad), lambda n, m: (n, m, 0)),
        ),
        compiler_params=pltpu.CompilerParams(
            dimension_semantics=("parallel", "parallel"),
            vmem_limit_bytes=32 * 1024 * 1024,
        ),
    )(x_col, w_mat, b_row, a_sc)

    out = out_col[:, :, :Cout].reshape(N, H, W, Cout)                # drop lane pad
    return jnp.transpose(out, (0, 3, 1, 2))                          # back to NCHW


def reference_forward(x_nchw, w_oihw, bias, alpha):
    """Pure-JAX reference (XLA conv, full f32) for correctness checking."""
    out = jax.lax.conv_general_dilated(
        x_nchw, w_oihw, window_strides=(1, 1), padding=((1, 1), (1, 1)),
        dimension_numbers=("NCHW", "OIHW", "NCHW"),
        precision=jax.lax.Precision.HIGHEST)
    out = out + bias.reshape(1, -1, 1, 1)
    return jnp.where(out >= 0, out, alpha * out)


if __name__ == "__main__":
    key = jax.random.PRNGKey(0)
    k_x, k_w, k_b = jax.random.split(key, 3)

    N, Cin, Cout, H, W = 2, 4, 8, 16, 16

    x = jax.random.normal(k_x, (N, Cin, H, W), jnp.float32)
    # Deterministic synthetic parameters (shapes match nn.Conv2d(Cin, Cout, 3)).
    w = jax.random.normal(k_w, (Cout, Cin, 3, 3), jnp.float32) * 0.1
    b = jax.random.normal(k_b, (Cout,), jnp.float32) * 0.1
    alpha = jnp.float32(0.25)  # nn.PReLU() default init (single shared parameter)

    out = conv_block_forward(x, w, b, alpha)
    jax.block_until_ready(out)
    assert out.shape == (N, Cout, H, W)

    # Kernel computes bf16 x bf16 -> f32; compare against an f32 reference fed
    # with the same bf16-rounded operands so the check stays tight.
    x_q = x.astype(jnp.bfloat16).astype(jnp.float32)
    w_q = w.astype(jnp.bfloat16).astype(jnp.float32)
    ref = reference_forward(x_q, w_q, b, alpha)
    assert jnp.allclose(out, ref, atol=1e-3, rtol=1e-3), "mismatch vs reference"

    print("KERNEL_OK")
</pallas_src>

<mosaic_0001>
module attributes {stable_mosaic.version = 11 : i64} {
  func.func @convblock_kernel(%arg0: i32, %arg1: i32, %arg2: memref<1x256x36xbf16, #tpu.memory_space<vmem>>, %arg3: memref<36x128xbf16, #tpu.memory_space<vmem>>, %arg4: memref<1x128xf32, #tpu.memory_space<vmem>>, %arg5: memref<1xf32, #tpu.memory_space<smem>>, %arg6: memref<1x256x128xf32, #tpu.memory_space<vmem>>) attributes {dimension_semantics = [#tpu.dimension_semantics<parallel>, #tpu.dimension_semantics<parallel>], iteration_bounds = array<i64: 2, 1>, scalar_prefetch = 0 : i64, scratch_operands = 0 : i64, tpu.core_type = #tpu.core_type<tc>, window_params = [{transform_indices = @transform_0, window_bounds = array<i64: 1, 256, 36>}, {pipeline_mode = #tpu.pipeline_mode<synchronous>, transform_indices = @transform_1, window_bounds = array<i64: 36, 128>}, {pipeline_mode = #tpu.pipeline_mode<synchronous>, transform_indices = @transform_2, window_bounds = array<i64: 1, 128>}, {transform_indices = @transform_3, window_bounds = array<i64: 1>}, {transform_indices = @transform_4, window_bounds = array<i64: 1, 256, 128>}]} {
    %c0 = arith.constant 0 : index
    %c0_0 = arith.constant 0 : index
    %c0_1 = arith.constant 0 : index
    %0 = vector.load %arg2[%c0, %c0_0, %c0_1] : memref<1x256x36xbf16, #tpu.memory_space<vmem>>, vector<1x256x36xbf16>
    %1 = vector.shape_cast %0 : vector<1x256x36xbf16> to vector<256x36xbf16>
    %c0_2 = arith.constant 0 : index
    %c0_3 = arith.constant 0 : index
    %2 = vector.load %arg3[%c0_2, %c0_3] : memref<36x128xbf16, #tpu.memory_space<vmem>>, vector<36x128xbf16>
    %cst = arith.constant dense<0.000000e+00> : vector<256x128xf32>
    %3 = tpu.matmul %1, %2, %cst {dimension_numbers = #tpu.dot_dimension_numbers<[1], [0], [0], [1], [0, 0, 1, 1], [], []>} : vector<256x36xbf16>, vector<36x128xbf16>, vector<256x128xf32> -> vector<256x128xf32>
    %c0_4 = arith.constant 0 : index
    %c0_5 = arith.constant 0 : index
    %4 = vector.load %arg4[%c0_4, %c0_5] : memref<1x128xf32, #tpu.memory_space<vmem>>, vector<1x128xf32>
    %5 = vector.broadcast %4 : vector<1x128xf32> to vector<256x128xf32>
    %6 = arith.addf %3, %5 : vector<256x128xf32>
    %c0_6 = arith.constant 0 : index
    %7 = memref.load %arg5[%c0_6] : memref<1xf32, #tpu.memory_space<smem>>
    %cst_7 = arith.constant 0.000000e+00 : f32
    %8 = vector.broadcast %cst_7 : f32 to vector<256x128xf32>
    %9 = arith.cmpf oge, %6, %8 : vector<256x128xf32>
    %10 = vector.broadcast %7 : f32 to vector<256x128xf32>
    %11 = arith.mulf %10, %6 : vector<256x128xf32>
    %12 = arith.select %9, %6, %11 : vector<256x128xi1>, vector<256x128xf32>
    %13 = vector.shape_cast %12 : vector<256x128xf32> to vector<1x256x128xf32>
    %c0_8 = arith.constant 0 : index
    %c0_9 = arith.constant 0 : index
    %c0_10 = arith.constant 0 : index
    %14 = vector.load %arg6[%c0_8, %c0_9, %c0_10] : memref<1x256x128xf32, #tpu.memory_space<vmem>>, vector<1x256x128xf32>
    tpu.vector_store %arg6[%c0_8, %c0_9, %c0_10], %13 {strides = array<i32>} : memref<1x256x128xf32, #tpu.memory_space<vmem>>, vector<1x256x128xf32>,
    return
  }
  func.func @transform_0(%arg0: i32, %arg1: i32) -> (i32, i32, i32) {
    %c0_i32 = arith.constant 0 : i32
    %c0_i32_0 = arith.constant 0 : i32
    return %arg0, %arg1, %c0_i32 : i32, i32, i32
  }
  func.func @transform_1(%arg0: i32, %arg1: i32) -> (i32, i32) {
    %c0_i32 = arith.constant 0 : i32
    %c0_i32_0 = arith.constant 0 : i32
    %c0_i32_1 = arith.constant 0 : i32
    return %c0_i32, %c0_i32_0 : i32, i32
  }
  func.func @transform_2(%arg0: i32, %arg1: i32) -> (i32, i32) {
    %c0_i32 = arith.constant 0 : i32
    %c0_i32_0 = arith.constant 0 : i32
    %c0_i32_1 = arith.constant 0 : i32
    return %c0_i32, %c0_i32_0 : i32, i32
  }
  func.func @transform_3(%arg0: i32, %arg1: i32) -> i32 {
    %c0_i32 = arith.constant 0 : i32
    %c0_i32_0 = arith.constant 0 : i32
    return %c0_i32 : i32
  }
  func.func @transform_4(%arg0: i32, %arg1: i32) -> (i32, i32, i32) {
    %c0_i32 = arith.constant 0 : i32
    %c0_i32_0 = arith.constant 0 : i32
    return %arg0, %arg1, %c0_i32 : i32, i32, i32
  }
}

</mosaic_0001>

<bundles_post_ra>
// kernel: tpu_custom_call.1
= control target key start
LH: loop header
LB: loop body
LE: loop exit
PB: predicated region body
PF: predicated region fallthrough
CT: control target
= control target key end

     0   :  { %s1375_s0 = inlined_call_operand.vmem [shape: bf16[2,256,36], index: 0, kind: input, shape index: {}]   ;;  %s1376_s1 = inlined_call_operand.vmem [shape: bf16[36,128], index: 1, kind: input, shape index: {}]   ;;  %s1377_s2 = inlined_call_operand.vmem [shape: f32[1,128], index: 2, kind: input, shape index: {}]   ;;  %s1378_s3 = inlined_call_operand.<no memory space> [shape: f32[1], index: 3, kind: input, shape index: {}]   ;;  %s1379_s4 = inlined_call_operand.hbm [shape: f32[2,256,128], index: 4, kind: output, shape index: {}]  }
   0x1   :  { %9 = sst [smem:[#allocation2]] %s1378_s3 }
   0x2   :  { %10 = vsyncpa [#allocation4], 0 }
   0x3   :  { %12 = vsyncpa [#allocation4 + $0x1], 0  ;;  %s1108_s17 = smov 0   ;;  %s1110_s18 = smov 0  }
   0x4   :  { %s1112_s19 = smov 0   ;;  %s1114_s20 = smov 0  }
   0x5   :  { %s1116_s21 = smov 0   ;;  %s1118_s22 = smov 0  }
   0x6 LB: > { %s807_s3 = sadd.s32 4294967295, %s1075_s22   ;;  %s808_s23 = sadd.s32 4294967294, %s1075_s22   ;;  %s1075_s22 = sphi %s1118_s22, %s18_s22   ;;  %s1071_s21 = sphi %s1116_s21, %s1386_s21   ;;  %s1067_s20 = sphi %s1114_s20, %s1385_s20   ;;  %s1063_s19 = sphi %s1112_s19, %s1384_s19   ;;  %s1059_s18 = sphi %s1110_s18, %s1383_s18   ;;  %s1055_s17 = sphi %s1108_s17, %s1382_s17  }
   0x7   : > { %s30_s24 = sadd.s32 1, %s1071_s21  ;;  %s130_s25 = sadd.s32 1, %s1063_s19 }
   0x8   : > { %p32_p0 = scmp.ge.s32.totalorder %s30_s24, 2  ;;  %p140_p1 = scmp.ne.s32.totalorder %s1063_s19, %s1059_s18 }
   0x9   : > { %p141_p2 = scmp.eq.s32.totalorder %s807_s3, 1  ;;  %p146_p3 = scmp.ne.s32.totalorder %s1059_s18, %s1055_s17 }
   0xa   : > { %s1388_s24 = smov (%p32_p0, %s30_s24), 0  ;;  %p147_p5 = scmp.eq.s32.totalorder %s808_s23, 1 }
   0xb   : > { %p1148_p4 = por %p141_p2, %p140_p1  ;;  %s125_s27 = ssub.s32 %s1071_s21, %s1388_s24 }
   0xc   : > { %p811_p6 = scmp.ge.s32.totalorder %s1075_s22, 1  ;;  %p128_p7 = scmp.eq.s32.totalorder %s125_s27, 0 }
   0xd   : > { %p1155_p8 = por %p147_p5, %p146_p3  ;;  %p187_p9 = scmp.lt.s32.totalorder %s1075_s22, 3 }
   0xe   : > { %s1161_s29 = scalar_select %p128_p7, %s1063_s19, %s130_s25  }
   0xf   : > { %p188_p10 = pnand %p811_p6, %p187_p9 }
  0x10   : > { %p218_p11 = scmp.lt.s32.totalorder (!%p188_p10), %s1067_s20, 1  ;;  %s582_s15 = sld [smem:[#allocation2]] (!%p188_p10) }
  0x11   : > { %191 = sbr.rel (%p188_p10) target bundleno = 279 (0x117), region = 36  ;;  %s214_s16 = sand.u32 (!%p188_p10), 1, %s1059_s18  }
  0x12   : > { %s812_s25 = sshll.u32 (!%p188_p10), %s214_s16, 8  ;;  %s857_s30 = sshll.u32 (!%p188_p10), %s1067_s20, 12 }
  0x13   : > { %s1229_s27 = scalar_lea.vmem (!%p188_p10), [#allocation3], %s812_s25  ;;  %s1322_s7 = scalar_lea.hbm (!%p188_p10), %s1379_s4, %s857_s30 }
  0x14   : > { %s728_s5 = sshll.u32 (!%p188_p10), %s1229_s27, 4  ;;  %s1077_s10 = smov (!%p188_p10), [#allocation3]   ;;  %s1324_s5 = int_to_ptr.vmem [resolvable:$true] %s728_s5 }
  0x15   : > { %s999_s9 = scalar_lea.vmem (!%p188_p10), %s1324_s5, 4096 }
  0x16   : > { %v980_v0 = vld [vmem:[%s1376_s1 + $0x10] ss:$0 sps:$4 sm:$0x33]   ;;  %vm417_vm0 = vcmask 1041408   ;;  %v981_v1 = vld [vmem:[%s1376_s1 + $0x8] sm:$0xff]   ;;  %s219_s8 = scalar_select %p218_p11, %s1067_s20, 1  ;;  %v1219_v22 = vstv %s582_s15 }
  0x17   : > { %921 = vmatprep.subr.msk.bf16.mxu0 %vm417_vm0, %v980_v0  ;;  %922 = vmatprep.subr.msk.bf16.mxu1 %vm417_vm0, %v980_v0  ;;  %v419_v2 = vsel %vm417_vm0, %v980_v0, 0  ;;  %v982_v3 = vld [vmem:[%s1376_s1] sm:$0xff]   ;;  %vm368_vm1 = vcmask 293888   ;;  %p1000_p12 = scmp.ne.s32.totalorder %s1324_s5, %s999_s9 }
  0x18   : > { %878 = vmatpush3.bf16.msra.mxu0 %v419_v2  ;;  %918 = vmatpush3.bf16.msra.mxu1 %v419_v2  ;;  %s856_s11 = sshll.u32 %s219_s8, 7  ;;  %v1215_v20 = vld [vmem:[%s1377_s2] ss:$0 sm:$0xff]  ;;  %s1330_s8 = scalar_lea.sflag [#allocation4], %s214_s16 }
  0x19   : > { %879 = vmatprep.subr.bf16.mxu0 %v981_v1  ;;  %916 = vmatprep.subr.bf16.mxu1 %v981_v1  ;;  %s1177_s14 = scalar_lea.vmem %s1375_s0, %s856_s11  ;;  %p1001_p13 = pnand %p1000_p12, %p1148_p4 }
  0x1a   : > { %v983_v4 = vld [vmem:[%s1177_s14] sm:$0xff]   ;;  %v985_v6 = vld [vmem:[%s1177_s14 + $0x8] sm:$0xff]   ;;  %v987_v8 = vld [vmem:[%s1177_s14 + $0x10] sm:$0xff]   ;;  %s1003_s11 = sshll.u32 %s1077_s10, 4  ;;  %s1004_s11 = int_to_ptr.vmem [resolvable:$false] %s1003_s11 }
  0x1b   : > { %v984_v5 = vld [vmem:[%s1177_s14 + $0x40] sm:$0xff]   ;;  %883 = vmatprep.mubr.msk.bf16.mxu0 %vm368_vm1, %v983_v4  ;;  %v986_v7 = vld [vmem:[%s1177_s14 + $0x48] sm:$0xff]   ;;  %v988_v9 = vld [vmem:[%s1177_s14 + $0x50] sm:$0xff]   ;;  %p1002_p0 = pneg %p1001_p13  ;;  %s1005_s12 = scalar_lea.vmem %s1004_s11, 8192 }
  0x1c   : > { %880 = vmatpush3.bf16.msra.mxu0 %v981_v1  ;;  %919 = vmatpush3.bf16.msra.mxu1 %v981_v1  ;;  %v989_v10 = vld [vmem:[%s1177_s14 + $0x18] sm:$0xff]   ;;  %v991_v12 = vld [vmem:[%s1177_s14 + $0x20] sm:$0xff]   ;;  %v993_v14 = vld [vmem:[%s1177_s14 + $0x28] sm:$0xff]   ;;  %p1006_p1 = scmp.lt.s32.totalorder %s1324_s5, %s1004_s11  ;;  %p1007_p2 = scmp.lt.s32.totalorder %s1005_s12, %s999_s9 }
  0x1d   : > { %881 = vmatprep.subr.bf16.mxu0 %v982_v3  ;;  %917 = vmatprep.subr.bf16.mxu1 %v982_v3  ;;  %v990_v11 = vld [vmem:[%s1177_s14 + $0x58] sm:$0xff]   ;;  %v992_v13 = vld [vmem:[%s1177_s14 + $0x60] sm:$0xff]   ;;  %v994_v15 = vld [vmem:[%s1177_s14 + $0x68] sm:$0xff]  }
  0x1e   : > { %899 = vmatprep.mubr.msk.bf16.mxu1 %vm368_vm1, %v984_v5  ;;  %v995_v16 = vld [vmem:[%s1177_s14 + $0x30] sm:$0xff]   ;;  %v997_v18 = vld [vmem:[%s1177_s14 + $0x38] sm:$0xff]   ;;  %p1008_p3 = por %p1007_p2, %p1006_p1 }
  0x1f   : > { %v996_v17 = vld [vmem:[%s1177_s14 + $0x70] sm:$0xff]   ;;  %v998_v19 = vld [vmem:[%s1177_s14 + $0x78] sm:$0xff]  }
  0x20   : > { %882 = vmatpush3.bf16.msra.mxu0 %v982_v3  ;;  %920 = vmatpush3.bf16.msra.mxu1 %v982_v3  ;;  %p1009_p5 = pnand %p1008_p3, %p1002_p0 }
  0x23   : > { %884 = vmatmul.mubr.msk.bf16.vlgmr.msra.gmra.mxu0 %vm368_vm1, %v985_v6  ;;  %900 = vmatmul.mubr.msk.bf16.vlgmr.msra.gmra.mxu1 %vm368_vm1, %v986_v7 }
  0x24   : > { %887 = vmatprep.mubr.msk.bf16.mxu0 %vm368_vm1, %v987_v8  ;;  %903 = vmatprep.mubr.msk.bf16.mxu1 %vm368_vm1, %v988_v9 }
  0x2b   : > { %888 = vmatmul.mubr.msk.bf16.gmra.mxu0 %vm368_vm1, %v989_v10  ;;  %904 = vmatmul.mubr.msk.bf16.gmra.mxu1 %vm368_vm1, %v990_v11 }
  0x2c   : > { %891 = vmatprep.mubr.msk.bf16.mxu0 %vm368_vm1, %v991_v12  ;;  %907 = vmatprep.mubr.msk.bf16.mxu1 %vm368_vm1, %v992_v13 }
  0x33   : > { %892 = vmatmul.mubr.msk.bf16.gmra.mxu0 %vm368_vm1, %v993_v14  ;;  %908 = vmatmul.mubr.msk.bf16.gmra.mxu1 %vm368_vm1, %v994_v15 }
  0x34   : > { %895 = vmatprep.mubr.msk.bf16.mxu0 %vm368_vm1, %v995_v16  ;;  %911 = vmatprep.mubr.msk.bf16.mxu1 %vm368_vm1, %v996_v17 }
  0x3b   : > { %896 = vmatmul.mubr.msk.bf16.gmra.mxu0 %vm368_vm1, %v997_v18  ;;  %912 = vmatmul.mubr.msk.bf16.gmra.mxu1 %vm368_vm1, %v998_v19 }
  0xe3   : > { %v885_v21 = vpop.f32.mrf.mxu0  ;;  %v901_v23 = vpop.f32.mrf.mxu1 }
  0xe4   : > { %v464_v24 = vadd.f32 %v885_v21, %v1215_v20  ;;  %v528_v25 = vadd.f32 %v901_v23, %v1215_v20 }
  0xe5   : > { %v455_v26 = vpop.f32.mrf.mxu0  ;;  %v519_v27 = vpop.f32.mrf.mxu1 }
  0xe6   : > { %vm585_vm2 = vcmp.ge.f32.partialorder %v464_v24, 0.0  ;;  %v618_v28 = vmul.f32 %v1219_v22, %v464_v24  ;;  %vm601_vm3 = vcmp.ge.f32.partialorder %v528_v25, 0.0  ;;  %v634_v29 = vmul.f32 %v1219_v22, %v528_v25 }
  0xe7   : > { %v456_v30 = vadd.f32 %v1215_v20, %v455_v26  ;;  %v520_v31 = vadd.f32 %v1215_v20, %v519_v27  ;;  %v886_v32 = vpop.f32.mrf.mxu0  ;;  %v902_v33 = vpop.f32.mrf.mxu1 }
  0xe8   : > { %v650_v34 = vsel %vm585_vm2, %v464_v24, %v618_v28  ;;  %v666_v35 = vsel %vm601_vm3, %v528_v25, %v634_v29  ;;  %v467_v36 = vadd.f32 %v886_v32, %v1215_v20  ;;  %v531_v37 = vadd.f32 %v902_v33, %v1215_v20 }
  0xe9   : > { %682 = vst [vmem:[%s1229_s27 + $0x10] sm:$0xff] %v650_v34  ;;  %698 = vst [vmem:[%s1229_s27 + $0x90] sm:$0xff] %v666_v35  ;;  %vm583_vm4 = vcmp.ge.f32.partialorder %v456_v30, 0.0  ;;  %v616_v38 = vmul.f32 %v1219_v22, %v456_v30  ;;  %vm599_vm5 = vcmp.ge.f32.partialorder %v520_v31, 0.0  ;;  %v632_v39 = vmul.f32 %v1219_v22, %v520_v31  ;;  %v458_v40 = vpop.f32.mrf.mxu0  ;;  %v522_v41 = vpop.f32.mrf.mxu1 }
  0xea   : > { %vm586_vm6 = vcmp.ge.f32.partialorder %v467_v36, 0.0  ;;  %v619_v42 = vmul.f32 %v1219_v22, %v467_v36  ;;  %vm602_vm7 = vcmp.ge.f32.partialorder %v531_v37, 0.0  ;;  %v635_v43 = vmul.f32 %v1219_v22, %v531_v37 }
  0xeb   : > { %v648_v44 = vsel %vm583_vm4, %v456_v30, %v616_v38  ;;  %v664_v45 = vsel %vm599_vm5, %v520_v31, %v632_v39  ;;  %v459_v46 = vadd.f32 %v1215_v20, %v458_v40  ;;  %v523_v47 = vadd.f32 %v1215_v20, %v522_v41  ;;  %v889_v48 = vpop.f32.mrf.mxu0  ;;  %v905_v49 = vpop.f32.mrf.mxu1 }
  0xec   : > { %680 = vst [vmem:[%s1229_s27] sm:$0xff] %v648_v44  ;;  %696 = vst [vmem:[%s1229_s27 + $0x80] sm:$0xff] %v664_v45  ;;  %v651_v50 = vsel %vm586_vm6, %v467_v36, %v619_v42  ;;  %v667_v51 = vsel %vm602_vm7, %v531_v37, %v635_v43  ;;  %v480_v52 = vadd.f32 %v889_v48, %v1215_v20 }
  0xed   : > { %v544_v53 = vadd.f32 %v905_v49, %v1215_v20  ;;  %683 = vst [vmem:[%s1229_s27 + $0x18] sm:$0xff] %v651_v50  ;;  %699 = vst [vmem:[%s1229_s27 + $0x98] sm:$0xff] %v667_v51  ;;  %vm584_vm8 = vcmp.ge.f32.partialorder %v459_v46, 0.0  ;;  %v617_v54 = vmul.f32 %v1219_v22, %v459_v46  ;;  %vm600_vm9 = vcmp.ge.f32.partialorder %v523_v47, 0.0  ;;  %v471_v56 = vpop.f32.mrf.mxu0  ;;  %v535_v57 = vpop.f32.mrf.mxu1 }
  0xee   : > { %v633_v55 = vmul.f32 %v1219_v22, %v523_v47  ;;  %vm589_vm10 = vcmp.ge.f32.partialorder %v480_v52, 0.0  ;;  %v622_v58 = vmul.f32 %v1219_v22, %v480_v52  ;;  %v472_v62 = vadd.f32 %v1215_v20, %v471_v56 }
  0xef   : > { %vm605_vm11 = vcmp.ge.f32.partialorder %v544_v53, 0.0  ;;  %v638_v59 = vmul.f32 %v1219_v22, %v544_v53  ;;  %v649_v60 = vsel %vm584_vm8, %v459_v46, %v617_v54  ;;  %v536_v63 = vadd.f32 %v1215_v20, %v535_v57  ;;  %v890_v0 = vpop.f32.mrf.mxu0  ;;  %v906_v1 = vpop.f32.mrf.mxu1 }
  0xf0   : > { %v665_v61 = vsel %vm600_vm9, %v523_v47, %v633_v55  ;;  %681 = vst [vmem:[%s1229_s27 + $0x8] sm:$0xff] %v649_v60  ;;  %v654_v2 = vsel %vm589_vm10, %v480_v52, %v622_v58  ;;  %v483_v4 = vadd.f32 %v890_v0, %v1215_v20  ;;  %v547_v5 = vadd.f32 %v906_v1, %v1215_v20 }
  0xf1   : > { %697 = vst [vmem:[%s1229_s27 + $0x88] sm:$0xff] %v665_v61  ;;  %v670_v3 = vsel %vm605_vm11, %v544_v53, %v638_v59  ;;  %686 = vst [vmem:[%s1229_s27 + $0x30] sm:$0xff] %v654_v2  ;;  %vm587_vm12 = vcmp.ge.f32.partialorder %v472_v62, 0.0  ;;  %v620_v6 = vmul.f32 %v1219_v22, %v472_v62  ;;  %vm603_vm13 = vcmp.ge.f32.partialorder %v536_v63, 0.0  ;;  %v474_v8 = vpop.f32.mrf.mxu0  ;;  %v538_v9 = vpop.f32.mrf.mxu1 }
  0xf2   : > { %702 = vst [vmem:[%s1229_s27 + $0xb0] sm:$0xff] %v670_v3  ;;  %v636_v7 = vmul.f32 %v1219_v22, %v536_v63  ;;  %vm590_vm14 = vcmp.ge.f32.partialorder %v483_v4, 0.0  ;;  %v623_v10 = vmul.f32 %v1219_v22, %v483_v4  ;;  %vm606_vm15 = vcmp.ge.f32.partialorder %v547_v5, 0.0 }
  0xf3   : > { %v639_v11 = vmul.f32 %v1219_v22, %v547_v5  ;;  %v652_v12 = vsel %vm587_vm12, %v472_v62, %v620_v6  ;;  %v475_v14 = vadd.f32 %v1215_v20, %v474_v8  ;;  %v539_v15 = vadd.f32 %v1215_v20, %v538_v9  ;;  %v893_v16 = vpop.f32.mrf.mxu0  ;;  %v909_v17 = vpop.f32.mrf.mxu1 }
  0xf4   : > { %v668_v13 = vsel %vm603_vm13, %v536_v63, %v636_v7  ;;  %684 = vst [vmem:[%s1229_s27 + $0x20] sm:$0xff] %v652_v12  ;;  %v655_v18 = vsel %vm590_vm14, %v483_v4, %v623_v10  ;;  %v496_v21 = vadd.f32 %v893_v16, %v1215_v20  ;;  %v560_v23 = vadd.f32 %v909_v17, %v1215_v20 }
  0xf5   : > { %700 = vst [vmem:[%s1229_s27 + $0xa0] sm:$0xff] %v668_v13  ;;  %v671_v19 = vsel %vm606_vm15, %v547_v5, %v639_v11  ;;  %687 = vst [vmem:[%s1229_s27 + $0x38] sm:$0xff] %v655_v18  ;;  %vm588_vm0 = vcmp.ge.f32.partialorder %v475_v14, 0.0  ;;  %v621_v24 = vmul.f32 %v1219_v22, %v475_v14  ;;  %vm604_vm1 = vcmp.ge.f32.partialorder %v539_v15, 0.0  ;;  %v487_v26 = vpop.f32.mrf.mxu0  ;;  %v551_v27 = vpop.f32.mrf.mxu1 }
  0xf6   : > { %703 = vst [vmem:[%s1229_s27 + $0xb8] sm:$0xff] %v671_v19  ;;  %v637_v25 = vmul.f32 %v1219_v22, %v539_v15  ;;  %vm593_vm2 = vcmp.ge.f32.partialorder %v496_v21, 0.0  ;;  %v626_v28 = vmul.f32 %v1219_v22, %v496_v21  ;;  %vm609_vm3 = vcmp.ge.f32.partialorder %v560_v23, 0.0 }
  0xf7   : > { %v642_v29 = vmul.f32 %v1219_v22, %v560_v23  ;;  %v653_v30 = vsel %vm588_vm0, %v475_v14, %v621_v24  ;;  %v488_v32 = vadd.f32 %v1215_v20, %v487_v26  ;;  %v552_v33 = vadd.f32 %v1215_v20, %v551_v27  ;;  %v894_v34 = vpop.f32.mrf.mxu0  ;;  %v910_v35 = vpop.f32.mrf.mxu1 }
  0xf8   : > { %v669_v31 = vsel %vm604_vm1, %v539_v15, %v637_v25  ;;  %685 = vst [vmem:[%s1229_s27 + $0x28] sm:$0xff] %v653_v30  ;;  %v658_v36 = vsel %vm593_vm2, %v496_v21, %v626_v28  ;;  %v499_v38 = vadd.f32 %v894_v34, %v1215_v20  ;;  %v563_v39 = vadd.f32 %v910_v35, %v1215_v20 }
  0xf9   : > { %701 = vst [vmem:[%s1229_s27 + $0xa8] sm:$0xff] %v669_v31  ;;  %v674_v37 = vsel %vm609_vm3, %v560_v23, %v642_v29  ;;  %690 = vst [vmem:[%s1229_s27 + $0x50] sm:$0xff] %v658_v36  ;;  %vm591_vm4 = vcmp.ge.f32.partialorder %v488_v32, 0.0  ;;  %v624_v40 = vmul.f32 %v1219_v22, %v488_v32  ;;  %vm607_vm5 = vcmp.ge.f32.partialorder %v552_v33, 0.0  ;;  %v490_v42 = vpop.f32.mrf.mxu0  ;;  %v554_v43 = vpop.f32.mrf.mxu1 }
  0xfa   : > { %706 = vst [vmem:[%s1229_s27 + $0xd0] sm:$0xff] %v674_v37  ;;  %v640_v41 = vmul.f32 %v1219_v22, %v552_v33  ;;  %vm594_vm6 = vcmp.ge.f32.partialorder %v499_v38, 0.0  ;;  %v627_v44 = vmul.f32 %v1219_v22, %v499_v38  ;;  %vm610_vm7 = vcmp.ge.f32.partialorder %v563_v39, 0.0 }
  0xfb   : > { %v643_v45 = vmul.f32 %v1219_v22, %v563_v39  ;;  %v656_v46 = vsel %vm591_vm4, %v488_v32, %v624_v40  ;;  %v491_v48 = vadd.f32 %v1215_v20, %v490_v42  ;;  %v555_v49 = vadd.f32 %v1215_v20, %v554_v43  ;;  %v897_v50 = vpop.f32.mrf.mxu0  ;;  %v913_v51 = vpop.f32.mrf.mxu1 }
  0xfc   : > { %v672_v47 = vsel %vm607_vm5, %v552_v33, %v640_v41  ;;  %688 = vst [vmem:[%s1229_s27 + $0x40] sm:$0xff] %v656_v46  ;;  %v659_v52 = vsel %vm594_vm6, %v499_v38, %v627_v44  ;;  %v512_v54 = vadd.f32 %v897_v50, %v1215_v20  ;;  %v576_v55 = vadd.f32 %v913_v51, %v1215_v20 }
  0xfd   : > { %704 = vst [vmem:[%s1229_s27 + $0xc0] sm:$0xff] %v672_v47  ;;  %v675_v53 = vsel %vm610_vm7, %v563_v39, %v643_v45  ;;  %691 = vst [vmem:[%s1229_s27 + $0x58] sm:$0xff] %v659_v52  ;;  %vm592_vm8 = vcmp.ge.f32.partialorder %v491_v48, 0.0  ;;  %v625_v56 = vmul.f32 %v1219_v22, %v491_v48  ;;  %vm608_vm9 = vcmp.ge.f32.partialorder %v555_v49, 0.0  ;;  %v503_v58 = vpop.f32.mrf.mxu0  ;;  %v567_v59 = vpop.f32.mrf.mxu1 }
  0xfe   : > { %707 = vst [vmem:[%s1229_s27 + $0xd8] sm:$0xff] %v675_v53  ;;  %v641_v57 = vmul.f32 %v1219_v22, %v555_v49  ;;  %vm597_vm10 = vcmp.ge.f32.partialorder %v512_v54, 0.0  ;;  %v630_v60 = vmul.f32 %v1219_v22, %v512_v54  ;;  %vm613_vm11 = vcmp.ge.f32.partialorder %v576_v55, 0.0 }
  0xff   : > { %v646_v61 = vmul.f32 %v1219_v22, %v576_v55  ;;  %v657_v62 = vsel %vm592_vm8, %v491_v48, %v625_v56  ;;  %v504_v0 = vadd.f32 %v1215_v20, %v503_v58  ;;  %v568_v1 = vadd.f32 %v1215_v20, %v567_v59  ;;  %v898_v2 = vpop.f32.mrf.mxu0  ;;  %v914_v3 = vpop.f32.mrf.mxu1 }
 0x100   : > { %v673_v63 = vsel %vm608_vm9, %v555_v49, %v641_v57  ;;  %689 = vst [vmem:[%s1229_s27 + $0x48] sm:$0xff] %v657_v62  ;;  %v662_v4 = vsel %vm597_vm10, %v512_v54, %v630_v60  ;;  %v515_v6 = vadd.f32 %v898_v2, %v1215_v20  ;;  %v579_v7 = vadd.f32 %v914_v3, %v1215_v20 }
 0x101   : > { %705 = vst [vmem:[%s1229_s27 + $0xc8] sm:$0xff] %v673_v63  ;;  %v678_v5 = vsel %vm613_vm11, %v576_v55, %v646_v61  ;;  %694 = vst [vmem:[%s1229_s27 + $0x70] sm:$0xff] %v662_v4  ;;  %vm595_vm12 = vcmp.ge.f32.partialorder %v504_v0, 0.0  ;;  %v628_v8 = vmul.f32 %v1219_v22, %v504_v0  ;;  %vm611_vm13 = vcmp.ge.f32.partialorder %v568_v1, 0.0  ;;  %v506_v10 = vpop.f32.mrf.mxu0  ;;  %v570_v11 = vpop.f32.mrf.mxu1 }
 0x102   : > { %710 = vst [vmem:[%s1229_s27 + $0xf0] sm:$0xff] %v678_v5  ;;  %v644_v9 = vmul.f32 %v1219_v22, %v568_v1  ;;  %vm598_vm14 = vcmp.ge.f32.partialorder %v515_v6, 0.0  ;;  %v631_v12 = vmul.f32 %v1219_v22, %v515_v6  ;;  %vm614_vm15 = vcmp.ge.f32.partialorder %v579_v7, 0.0 }
 0x103   : > { %v647_v13 = vmul.f32 %v1219_v22, %v579_v7  ;;  %v660_v14 = vsel %vm595_vm12, %v504_v0, %v628_v8  ;;  %v507_v16 = vadd.f32 %v1215_v20, %v506_v10  ;;  %v571_v17 = vadd.f32 %v1215_v20, %v570_v11 }
 0x104   : > { %v676_v15 = vsel %vm611_vm13, %v568_v1, %v644_v9  ;;  %692 = vst [vmem:[%s1229_s27 + $0x60] sm:$0xff] %v660_v14  ;;  %v663_v18 = vsel %vm598_vm14, %v515_v6, %v631_v12 }
 0x105   : > { %708 = vst [vmem:[%s1229_s27 + $0xe0] sm:$0xff] %v676_v15  ;;  %v679_v19 = vsel %vm614_vm15, %v579_v7, %v647_v13  ;;  %695 = vst [vmem:[%s1229_s27 + $0x78] sm:$0xff] %v663_v18  ;;  %vm596_vm0 = vcmp.ge.f32.partialorder %v507_v16, 0.0  ;;  %v629_v21 = vmul.f32 %v1219_v22, %v507_v16  ;;  %vm612_vm1 = vcmp.ge.f32.partialorder %v571_v17, 0.0 }
 0x106   : > { %711 = vst [vmem:[%s1229_s27 + $0xf8] sm:$0xff] %v679_v19  ;;  %v645_v23 = vmul.f32 %v1219_v22, %v571_v17 }
 0x107   : > { %v661_v20 = vsel %vm596_vm0, %v507_v16, %v629_v21 }
 0x108   : > { %v677_v24 = vsel %vm612_vm1, %v571_v17, %v645_v23  ;;  %693 = vst [vmem:[%s1229_s27 + $0x68] sm:$0xff] %v661_v20 }
 0x109   : > { %709 = vst [vmem:[%s1229_s27 + $0xe8] sm:$0xff] %v677_v24 }
 0x10a   : > { %1012 = shalt.err (!%p1009_p5)
}
 0x10b   : > { %s1013_s13 = scalar_lea.hbm %s1322_s7, 4096  ;;  %s1017_s16 = scalar_lea.hbm %s1379_s4, 8192 }
 0x10c   : > { %p1014_p6 = scmp.ne.s32.totalorder %s1322_s7, %s1013_s13  ;;  %p1018_p10 = scmp.lt.s32.totalorder %s1322_s7, %s1379_s4 }
 0x10d   : > { %p1019_p11 = scmp.lt.s32.totalorder %s1017_s16, %s1013_s13 }
 0x10e   : > { %p1015_p7 = pnand %p1014_p6, %p1148_p4 }
 0x10f   : > { %p1020_p12 = por %p1019_p11, %p1018_p10 }
 0x110   : > { %p1016_p9 = pneg %p1015_p7 }
 0x112   : > { %p1021_p13 = pnand %p1020_p12, %p1016_p9 }
 0x114   : > { %1024 = shalt.err (!%p1021_p13)
}
 0x115   : > { %s1078_s25 = smov 128   ;;  %s1079_s27 = smov 8  }
 0x116   : > { %923 = dma.vmem_to_hbm [thread:$0]  (%p1148_p4), %s1324_s5, 4096, %s1322_s7, %s1330_s8, %s1078_s25, %s1078_s25, %s1079_s27  }
 0x117 PF: > { %p929_p0 = scmp.ge.s32.totalorder %s1075_s22, 2  ;;  %s743_s30 = sand.u32 1, %s1055_s17  }
 0x118   : > { %s744_s20 = scalar_lea.sflag [#allocation4], %s743_s30 }
 0x119   : > { %p926_p1 = pnand %p929_p0, %p1155_p8 }
 0x11b   : > { %p927_p2 = pneg %p926_p1 }
 0x11d   : > { %1050 = dma.done.wait (%p927_p2), %s744_s20, 4096  }
 0x11e   : > { %1052 = vsyncadd (%p927_p2), %s744_s20, 4294963200  ;;  %s18_s22 = sadd.s32 1, %s1075_s22   ;;  %s1382_s17 = smov %s1059_s18 }
 0x11f   : > { %p15_p3 = scmp.ge.s32.totalorder %s18_s22, 4   ;;  %s1383_s18 = smov %s1063_s19 }
 0x120   : > { %s1384_s19 = smov %s1161_s29  ;;  %s1385_s20 = smov %s1071_s21 }
 0x121   : > { %s1386_s21 = smov %s1388_s24  ;;  %17 = sbr.rel (!%p15_p3) target bundleno = 6 (0x6), region = 71 }
 0x126   :  { %749 = vsyncpa [#allocation4], 1 }
 0x127   :  { %751 = vsyncpa [#allocation4 + $0x1], 1 }

</bundles_post_ra>
